<compile_context>
chip_gen: v5e
topology: v5e:2x2
jax: 0.10.0
libtpu: 0.0.40
codegen_flags: <defaults>
</compile_context>

<pallas_src>
import jax
import jax.numpy as jnp
from jax import lax
from jax.experimental import pallas as pl
from jax.experimental.pallas import tpu as pltpu

GAMMA_NEG = 4
GAMMA_POS = 0

LANES = 128
ACC_ROWS = 64                          # (64,128) f32 accumulator = 8 parallel vreg chains
MAX_ROW_TILE = 16384                   # absolute cap on rows per tile
INPUT_VMEM_BUDGET = 16 * 1024 * 1024   # budget for double-buffered input tiles
VMEM_LIMIT_BYTES = 32 * 1024 * 1024    # explicit scoped-VMEM limit (safe on v5e/v6e/v7x)


def _ipow(v, g: int):
    """v**g for small non-negative integer g via square-and-multiply.

    Returns None for g == 0 so callers can skip the multiply-by-ones.
    """
    if g == 0:
        return None
    result = None
    base = v
    e = g
    while e > 0:
        if e & 1:
            result = base if result is None else result * base
        e >>= 1
        if e:
            base = base * base
    return result


def _mul(a, b):
    return b if a is None else a * b


def _make_asl_kernel(*, gamma_neg, gamma_pos, steps, n_tiles, row_tile,
                     n_valid, clamp_eps, y_is_binary_int, has_overhang):
    full_rows = n_valid // LANES
    lane_rem = n_valid % LANES
    # True iff the grid covers more elements than exist (row/lane tail or
    # tiny-input padding) -> mask those elements to contribute exactly 0.
    needs_mask = (n_tiles * row_tile * LANES != n_valid)

    def compute(x_ref, y_ref, acc_ref, tile_idx):
        # Cast after the load: x may arrive as bf16 (halves its HBM traffic);
        # all arithmetic stays in f32 (required on v5e, fine on v6e/v7x).
        x = x_ref[...].astype(jnp.float32)
        if clamp_eps > 0.0:
            # Optional guard against x==0 / x==1 (0 * -inf = NaN). Off by
            # default to match the PyTorch module exactly.
            x = jnp.clip(x, clamp_eps, 1.0 - clamp_eps)
        one_minus_x = 1.0 - x

        pos = _mul(_ipow(one_minus_x, gamma_pos), jnp.log(x))       # EUP log
        neg = _mul(_ipow(x, gamma_neg), jnp.log(one_minus_x))       # EUP log

        if y_is_binary_int:
            # Binary targets: one select replaces 2 muls + 1 sub + 1 add.
            loss = jnp.where(y_ref[...] != 0, pos, neg)
        else:
            yv = y_ref[...].astype(jnp.float32)
            loss = yv * pos + (1.0 - yv) * neg

        if needs_mask:
            row_ids = tile_idx * row_tile + lax.broadcasted_iota(
                jnp.int32, (row_tile, LANES), 0)
            valid = row_ids < full_rows
            if lane_rem:
                col_ids = lax.broadcasted_iota(jnp.int32, (row_tile, LANES), 1)
                valid = valid | ((row_ids == full_rows) & (col_ids < lane_rem))
            # Select discards any NaN/inf computed on padded/garbage elements.
            loss = jnp.where(valid, loss, 0.0)

        # Fold the (row_tile, 128) tile into the (64, 128) resident accumulator
        # with pure VPU adds split over 8 independent vreg chains; the single
        # expensive cross-lane/sublane reduce happens outside the kernel.
        acc_ref[...] += loss.reshape(-1, ACC_ROWS, LANES).sum(axis=0)

    def kernel(x_ref, y_ref, acc_ref):
        p = pl.program_id(0)
        i = pl.program_id(1)
        tile_idx = p * steps + i

        # Output block is resident across the inner ("arbitrary") axis: zero it
        # once per megacore slice.
        @pl.when(i == 0)
        def _():
            acc_ref[...] = jnp.zeros_like(acc_ref)

        if has_overhang:
            # Odd tile count with a 2-way core split: the clamped overhang step
            # re-reads the last tile; skip its accumulation so nothing is
            # double-counted.
            @pl.when(tile_idx < n_tiles)
            def _():
                compute(x_ref, y_ref, acc_ref, tile_idx)
        else:
            compute(x_ref, y_ref, acc_ref, tile_idx)

    return kernel


def asl_loss(x, y, gamma_neg: int = GAMMA_NEG, gamma_pos: int = GAMMA_POS,
             clamp_eps: float = 0.0):
    assert x.shape == y.shape, (x.shape, y.shape)
    assert gamma_neg >= 0 and gamma_pos >= 0
    n_elems = x.size
    assert n_elems > 0

    # Binary targets can be transported narrow (1 B/elem). Bool is converted to
    # int8 so the kernel only ever sees int8 / float transport for y.
    if y.dtype == jnp.bool_:
        y = y.astype(jnp.int8)
    y_is_binary_int = bool(jnp.issubdtype(y.dtype, jnp.integer))

    xf = x.reshape(-1)
    yf = y.reshape(-1)
    rows = pl.cdiv(n_elems, LANES)
    lane_pad = rows * LANES - n_elems
    if lane_pad:
        # TODO(synk): a ragged lane tail forces a pad-copy of the flat inputs;
        # the padded elements are masked to contribute exactly 0 in-kernel.
        xf = jnp.pad(xf, (0, lane_pad), constant_values=0.5)
        yf = jnp.pad(yf, (0, lane_pad))
    x2 = xf.reshape(rows, LANES)
    y2 = yf.reshape(rows, LANES)

    # Row tile from the VMEM byte budget (multiple of ACC_ROWS=64, which also
    # satisfies the sublane packing for f32/bf16/int8 blocks).
    per_row_bytes = LANES * (x2.dtype.itemsize + y2.dtype.itemsize)
    budget_rows = (INPUT_VMEM_BUDGET // (2 * per_row_bytes)) // ACC_ROWS * ACC_ROWS
    budget_rows = max(ACC_ROWS, min(budget_rows, MAX_ROW_TILE))

    if rows < ACC_ROWS:
        # Tiny input: pad rows up to one aligned tile (cheap) so every block
        # start is in-bounds; padded rows are masked to 0 in-kernel.
        row_tile = ACC_ROWS
        x2 = jnp.pad(x2, ((0, ACC_ROWS - rows), (0, 0)), constant_values=0.5)
        y2 = jnp.pad(y2, ((0, ACC_ROWS - rows), (0, 0)))
        rows_arr = ACC_ROWS
    else:
        # Keep row_tile <= rows so every block starts in-bounds; the last block
        # may extend past the end (standard partial block, masked in-kernel).
        row_tile = min(budget_rows, (rows // ACC_ROWS) * ACC_ROWS)
        rows_arr = rows

    n_tiles = pl.cdiv(rows_arr, row_tile)
    # Unconditional 2-way split whenever there is more than one tile (v7x TCs);
    # on 1-TC chips the extra grid axis just runs serially.
    n_par = 2 if n_tiles >= 2 else 1
    steps = pl.cdiv(n_tiles, n_par)
    has_overhang = (n_par * steps != n_tiles)
    last_tile = n_tiles - 1

    if has_overhang:
        def in_map(p, i):
            return (jnp.minimum(p * steps + i, last_tile), 0)
    else:
        def in_map(p, i):
            return (p * steps + i, 0)

    kernel = _make_asl_kernel(
        gamma_neg=gamma_neg, gamma_pos=gamma_pos, steps=steps, n_tiles=n_tiles,
        row_tile=row_tile, n_valid=n_elems, clamp_eps=float(clamp_eps),
        y_is_binary_int=y_is_binary_int, has_overhang=has_overhang)

    out_rows = n_par * ACC_ROWS
    cost = pl.CostEstimate(
        flops=10 * n_elems,
        transcendentals=2 * n_elems,
        bytes_accessed=(x2.size * x2.dtype.itemsize
                        + y2.size * y2.dtype.itemsize
                        + out_rows * LANES * 4),
    )

    partials = pl.pallas_call(
        kernel,
        out_shape=jax.ShapeDtypeStruct((out_rows, LANES), jnp.float32),
        grid_spec=pltpu.PrefetchScalarGridSpec(
            num_scalar_prefetch=0,
            grid=(n_par, steps),
            in_specs=[
                pl.BlockSpec((row_tile, LANES), in_map),
                pl.BlockSpec((row_tile, LANES), in_map),
            ],
            out_specs=pl.BlockSpec((ACC_ROWS, LANES), lambda p, i: (p, 0)),
        ),
        compiler_params=pltpu.CompilerParams(
            dimension_semantics=("parallel", "arbitrary"),
            vmem_limit_bytes=VMEM_LIMIT_BYTES,
        ),
        cost_estimate=cost,
    )(x2, y2)

    # Single cross-lane/sublane reduction + scale + negate on tiny partials.
    return -(jnp.sum(partials) / n_elems)


if __name__ == "__main__":
    key = jax.random.PRNGKey(0)
    kx, ky = jax.random.split(key)

    # x: predicted probabilities in (0, 1); y: binary multi-label targets.
    shape = (2, 4, 16, 16)
    logits = jax.random.normal(kx, shape, dtype=jnp.float32)
    x = jnp.clip(jax.nn.sigmoid(logits), 1e-4, 1.0 - 1e-4)
    y_bool = jax.random.uniform(ky, shape) > 0.5
    y_i8 = y_bool.astype(jnp.int8)     # narrow (1 B/elem) binary transport
    y_f32 = y_bool.astype(jnp.float32)

    # Pure-JAX reference (f32 inputs).
    loss_pos = y_f32 * jnp.power(1.0 - x, GAMMA_POS) * jnp.log(x)
    loss_neg = (1.0 - y_f32) * jnp.power(x, GAMMA_NEG) * jnp.log(1.0 - x)
    ref = -jnp.mean(loss_pos + loss_neg)

    # 1) int8 (binary) target transport — exact vs f32 reference.
    loss_i8 = asl_loss(x, y_i8)
    jax.block_until_ready(loss_i8)
    assert jnp.allclose(loss_i8, ref, rtol=1e-5, atol=1e-5), (loss_i8, ref)

    # 2) float target transport (soft-label blend path) — exact vs reference.
    loss_f = asl_loss(x, y_f32)
    jax.block_until_ready(loss_f)
    assert jnp.allclose(loss_f, ref, rtol=1e-5, atol=1e-5), (loss_f, ref)

    # 3) bf16 transport of x (reference recomputed on the bf16-rounded values).
    x_bf = x.astype(jnp.bfloat16)
    x_bf32 = x_bf.astype(jnp.float32)
    ref_bf = -jnp.mean(y_f32 * jnp.log(x_bf32)
                       + (1.0 - y_f32) * jnp.power(x_bf32, GAMMA_NEG) * jnp.log(1.0 - x_bf32))
    loss_bf = asl_loss(x_bf, y_i8)
    jax.block_until_ready(loss_bf)
    assert jnp.allclose(loss_bf, ref_bf, rtol=1e-3, atol=1e-3), (loss_bf, ref_bf)

    print("KERNEL_OK")
</pallas_src>

<mosaic_0001>
module attributes {stable_mosaic.version = 11 : i64} {
  func.func @kernel(%arg0: i32, %arg1: i32, %arg2: memref<64x128xf32, #tpu.memory_space<vmem>>, %arg3: memref<64x128xi8, #tpu.memory_space<vmem>>, %arg4: memref<64x128xf32, #tpu.memory_space<vmem>>) attributes {dimension_semantics = [#tpu.dimension_semantics<parallel>, #tpu.dimension_semantics<arbitrary>], iteration_bounds = array<i64: 1, 1>, scalar_prefetch = 0 : i64, scratch_operands = 0 : i64, tpu.core_type = #tpu.core_type<tc>, window_params = [{transform_indices = @transform_0, window_bounds = array<i64: 64, 128>}, {transform_indices = @transform_1, window_bounds = array<i64: 64, 128>}, {transform_indices = @transform_2, window_bounds = array<i64: 64, 128>}]} {
    %c1_i32 = arith.constant 1 : i32
    %0 = arith.muli %arg0, %c1_i32 : i32
    %1 = arith.addi %0, %arg1 : i32
    %c0_i32 = arith.constant 0 : i32
    %2 = arith.cmpi eq, %arg1, %c0_i32 : i32
    %3 = arith.extui %2 : i1 to i32
    %c0_i32_0 = arith.constant 0 : i32
    %4 = arith.cmpi ne, %3, %c0_i32_0 : i32
    scf.if %4 {
      %cst_10 = arith.constant 0.000000e+00 : f32
      %30 = vector.broadcast %cst_10 : f32 to vector<64x128xf32>
      %c0_11 = arith.constant 0 : index
      %c0_12 = arith.constant 0 : index
      %31 = vector.load %arg4[%c0_11, %c0_12] : memref<64x128xf32, #tpu.memory_space<vmem>>, vector<64x128xf32>
      tpu.vector_store %arg4[%c0_11, %c0_12], %30 {strides = array<i32>} : memref<64x128xf32, #tpu.memory_space<vmem>>, vector<64x128xf32>,
    } else {
    }
    %c0 = arith.constant 0 : index
    %c0_1 = arith.constant 0 : index
    %5 = vector.load %arg2[%c0, %c0_1] : memref<64x128xf32, #tpu.memory_space<vmem>>, vector<64x128xf32>
    %cst = arith.constant 1.000000e+00 : f32
    %6 = vector.broadcast %cst : f32 to vector<64x128xf32>
    %7 = arith.subf %6, %5 : vector<64x128xf32>
    %8 = math.log %5 : vector<64x128xf32>
    %9 = arith.mulf %5, %5 : vector<64x128xf32>
    %10 = arith.mulf %9, %9 : vector<64x128xf32>
    %11 = math.log %7 : vector<64x128xf32>
    %12 = arith.mulf %10, %11 : vector<64x128xf32>
    %c0_2 = arith.constant 0 : index
    %c0_3 = arith.constant 0 : index
    %13 = vector.load %arg3[%c0_2, %c0_3] : memref<64x128xi8, #tpu.memory_space<vmem>>, vector<64x128xi8>
    %c0_i8 = arith.constant 0 : i8
    %14 = vector.broadcast %c0_i8 : i8 to vector<64x128xi8>
    %15 = arith.cmpi ne, %13, %14 : vector<64x128xi8>
    %16 = arith.select %15, %8, %12 : vector<64x128xi1>, vector<64x128xf32>
    %c64_i32 = arith.constant 64 : i32
    %17 = arith.muli %1, %c64_i32 : i32
    %18 = tpu.iota {dimensions = array<i32: 0>} : vector<64x128xi32>
    %19 = vector.broadcast %17 : i32 to vector<64x128xi32>
    %20 = arith.addi %19, %18 : vector<64x128xi32>
    %c16_i32 = arith.constant 16 : i32
    %21 = vector.broadcast %c16_i32 : i32 to vector<64x128xi32>
    %22 = arith.cmpi slt, %20, %21 : vector<64x128xi32>
    %cst_4 = arith.constant 0.000000e+00 : f32
    %23 = vector.broadcast %cst_4 : f32 to vector<64x128xf32>
    %24 = arith.select %22, %16, %23 : vector<64x128xi1>, vector<64x128xf32>
    %c0_5 = arith.constant 0 : index
    %c0_6 = arith.constant 0 : index
    %25 = vector.load %arg4[%c0_5, %c0_6] : memref<64x128xf32, #tpu.memory_space<vmem>>, vector<64x128xf32>
    %26 = vector.shape_cast %24 : vector<64x128xf32> to vector<1x64x128xf32>
    %cst_7 = arith.constant dense<0.000000e+00> : vector<64x128xf32>
    %27 = vector.multi_reduction <add>, %26, %cst_7 [0] : vector<1x64x128xf32> to vector<64x128xf32>
    %28 = arith.addf %25, %27 : vector<64x128xf32>
    %c0_8 = arith.constant 0 : index
    %c0_9 = arith.constant 0 : index
    %29 = vector.load %arg4[%c0_8, %c0_9] : memref<64x128xf32, #tpu.memory_space<vmem>>, vector<64x128xf32>
    tpu.vector_store %arg4[%c0_8, %c0_9], %28 {strides = array<i32>} : memref<64x128xf32, #tpu.memory_space<vmem>>, vector<64x128xf32>,
    return
  }
  func.func @transform_0(%arg0: i32, %arg1: i32) -> (i32, i32) {
    %c1_i32 = arith.constant 1 : i32
    %0 = arith.muli %arg0, %c1_i32 : i32
    %1 = arith.addi %0, %arg1 : i32
    %c0_i32 = arith.constant 0 : i32
    %c0_i32_0 = arith.constant 0 : i32
    return %1, %c0_i32 : i32, i32
  }
  func.func @transform_1(%arg0: i32, %arg1: i32) -> (i32, i32) {
    %c1_i32 = arith.constant 1 : i32
    %0 = arith.muli %arg0, %c1_i32 : i32
    %1 = arith.addi %0, %arg1 : i32
    %c0_i32 = arith.constant 0 : i32
    %c0_i32_0 = arith.constant 0 : i32
    return %1, %c0_i32 : i32, i32
  }
  func.func @transform_2(%arg0: i32, %arg1: i32) -> (i32, i32) {
    %c0_i32 = arith.constant 0 : i32
    %c0_i32_0 = arith.constant 0 : i32
    return %arg0, %c0_i32 : i32, i32
  }
}

</mosaic_0001>

<bundles_post_ra>
// kernel: tpu_custom_call.1
= control target key start
LH: loop header
LB: loop body
LE: loop exit
PB: predicated region body
PF: predicated region fallthrough
CT: control target
= control target key end

     0   :  { %7 = vsyncpa [#allocation3], 0  ;;  %s433_s0 = inlined_call_operand.hbm [shape: f32[64,128], index: 0, kind: input, shape index: {}]   ;;  %s434_s1 = inlined_call_operand.hbm [shape: s8[64,128], index: 1, kind: input, shape index: {}]   ;;  %s435_s2 = inlined_call_operand.hbm [shape: f32[64,128], index: 2, kind: output, shape index: {}]  }
   0x1   :  { %8 = vsyncpa [#allocation6], 0 }
   0x2   :  { %9 = vsyncpa [#allocation4], 0  ;;  %s18_s11 = sshll.u32 %s433_s0, 4  ;;  %s393_s12 = smov [#allocation2]   ;;  %s19_s11 = int_to_ptr.hbm [resolvable:$true] %s18_s11 }
   0x3   :  { %s20_s13 = sshll.u32 %s393_s12, 4  ;;  %s35_s16 = sshll.u32 %s434_s1, 4  ;;  %s21_s13 = int_to_ptr.vmem [resolvable:$true] %s20_s13  ;;  %s36_s16 = int_to_ptr.hbm [resolvable:$true] %s35_s16 }
   0x4   :  { %s394_s17 = smov 128   ;;  %s395_s18 = smov 8  }
   0x5   :  { %26 = dma.hbm_to_vmem [thread:$0]  %s19_s11, 1024, %s21_s13, [#allocation3], %s394_s17, %s394_s17, %s395_s18  }
   0x6   :  { %s396_s19 = smov [#allocation5]  }
   0x7   :  { %s37_s20 = sshll.u32 %s396_s19, 4  ;;  %s38_s20 = int_to_ptr.vmem [resolvable:$true] %s37_s20 }
   0x8   :  { %43 = dma.hbm_to_vmem [thread:$0]  %s36_s16, 256, %s38_s20, [#allocation6], %s394_s17, %s394_s17, %s395_s18  }
   0x9   :  { %387 = dma.done.wait [#allocation3], 1024  }
   0xa   :  { %388 = vsyncadd [#allocation3], 4294966272 }
   0xb   :  { %389 = dma.done.wait [#allocation6], 256  }
   0xc   :  { %390 = vsyncadd [#allocation6], 4294967040  ;;  %v397_v0 = vmov 0.0   ;;  %v71_v1 = vld [vmem:[#allocation2] sm:$0xff]  ;;  %v72_v3 = vld [vmem:[#allocation2 + $0x8] sm:$0xff]  ;;  %v398_v5 = vmov 0  }
   0xd   :  { %274 = vst [vmem:[#allocation7 + $0x10] sm:$0xff] %v397_v0  ;;  %v143_v2 = vld [vmem:[#allocation5] sm:$0xff]  ;;  %v79_v4 = vsub.f32 1.0, %v71_v1  ;;  %307 = vlog2.f32 %v71_v1  ;;  %v80_v7 = vsub.f32 1.0, %v72_v3  ;;  %v103_v10 = vmul.f32 %v71_v1, %v71_v1  ;;  %s399_s0 = smov [#allocation7]   ;;  %s286_s23 = sshll.u32 %s435_s2, 4  ;;  %s287_s23 = int_to_ptr.hbm [resolvable:$true] %s286_s23 }
   0xe   :  { %275 = vst [vmem:[#allocation7 + $0x18] sm:$0xff] %v397_v0  ;;  %vm145_vm0 = vnez %v143_v2  ;;  %309 = vlog2.f32 %v72_v3  ;;  %v104_v12 = vmul.f32 %v72_v3, %v72_v3  ;;  %s284_s1 = sshll.u32 %s399_s0, 4  ;;  %s285_s1 = int_to_ptr.vmem [resolvable:$true] %s284_s1 }
   0xf   :  { %276 = vst [vmem:[#allocation7 + $0x20] sm:$0xff] %v397_v0  ;;  %v147_v6 = vsel %vm145_vm0, 16843009, %v398_v5  ;;  %311 = vlog2.f32 %v79_v4  ;;  %v111_v18 = vmul.f32 %v103_v10, %v103_v10 }
  0x10   :  { %277 = vst [vmem:[#allocation7 + $0x28] sm:$0xff] %v397_v0  ;;  %v149_v8 = vunpack.c.0.s8 %v147_v6  ;;  %v150_v9 = vunpack.c.1.s8 %v147_v6  ;;  %313 = vlog2.f32 %v80_v7  ;;  %v112_v21 = vmul.f32 %v104_v12, %v104_v12 }
  0x11   :  { %278 = vst [vmem:[#allocation7 + $0x30] sm:$0xff] %v397_v0 }
  0x12   :  { %279 = vst [vmem:[#allocation7 + $0x38] sm:$0xff] %v397_v0  ;;  %v157_v11 = vpack.c.b16 %v149_v8, %v149_v8  ;;  %v159_v13 = vpack.c.b16 %v150_v9, %v150_v9 }
  0x13   :  { %v308_v14 = vpop.eup %307 }
  0x14   :  { %v158_v15 = vpack.c.b8 %v157_v11, %v157_v11  ;;  %v160_v16 = vpack.c.b8 %v159_v13, %v159_v13  ;;  %v310_v17 = vpop.eup %309  ;;  %v88_v20 = vmul.f32 0.6931472, %v308_v14 }
  0x15   :  { %v312_v19 = vpop.eup %311  ;;  %v90_v27 = vmul.f32 0.6931472, %v310_v17 }
  0x16   :  { %vm173_vm1 = vnez %v158_v15  ;;  %vm174_vm2 = vnez %v160_v16  ;;  %v314_v22 = vpop.eup %313  ;;  %v120_v23 = vmul.f32 0.6931472, %v312_v19 }
  0x17   :  { %v181_v24 = vsel %vm173_vm1, 16843009, %v398_v5  ;;  %v182_v25 = vsel %vm174_vm2, 16843009, %v398_v5  ;;  %v122_v28 = vmul.f32 0.6931472, %v314_v22 }
  0x18   :  { %v189_v26 = vunpack.c.0.s8 %v181_v24  ;;  %v190_v29 = vunpack.c.0.s8 %v182_v25  ;;  %v135_v30 = vmul.f32 %v120_v23, %v111_v18 }
  0x19   :  { %v136_v31 = vmul.f32 %v122_v28, %v112_v21 }
  0x1a   :  { %vm197_vm3 = vcmp.ne.s32.totalorder %v189_v26, 0  ;;  %vm198_vm4 = vcmp.ne.s32.totalorder %v190_v29, 0 }
  0x1b   :  { %v205_v32 = vsel %vm197_vm3, %v88_v20, %v135_v30  ;;  %v206_v33 = vsel %vm198_vm4, %v90_v27, %v136_v31 }
  0x1c   :  { %272 = vst [vmem:[#allocation7] sm:$0xff] %v205_v32 }
  0x1d   :  { %273 = vst [vmem:[#allocation7 + $0x8] sm:$0xff] %v206_v33 }
  0x1e   :  { %292 = dma.vmem_to_hbm [thread:$0]  %s285_s1, 1024, %s287_s23, [#allocation4], %s394_s17, %s394_s17, %s395_s18  }
  0x1f   :  { %391 = dma.done.wait [#allocation4], 1024  }
  0x20   :  { %392 = vsyncadd [#allocation4], 4294966272 }
  0x21   :  { %297 = vsyncpa [#allocation3], 1 }
  0x22   :  { %298 = vsyncpa [#allocation6], 1 }
  0x23   :  { %299 = vsyncpa [#allocation4], 1 }

</bundles_post_ra>
